<compile_context>
chip_gen: v7x
topology: tpu7x:2x2x1
jax: 0.10.0
libtpu: 0.0.40
codegen_flags: <defaults>
</compile_context>

<pallas_src>
import math
import jax
import jax.numpy as jnp
from jax.experimental import pallas as pl
from jax.experimental.pallas import tpu as pltpu


def _round_up(n, m):
    return ((n + m - 1) // m) * m


def _cdiv(a, b):
    return (a + b - 1) // b


# --------------------------------------------------------------------------
# Kernel: one batch tile -> y = tanh(x @ W_total + b_total)
# --------------------------------------------------------------------------
def fc_fused_kernel(x_ref, w_ref, b_ref, o_ref):
    y = jnp.dot(x_ref[...], w_ref[...], preferred_element_type=jnp.float32)
    o_ref[...] = jnp.tanh(y + b_ref[...]).astype(o_ref.dtype)


# --------------------------------------------------------------------------
# One-time parameter fusion (hoisted out of the per-call path).
# --------------------------------------------------------------------------
def fuse_fc_params(weights, biases):
    """Collapse the activation-free affine chain into a single (d_in, d_out)
    weight and (1, d_out) bias.  Call once at init; reuse every forward."""
    w_total = weights[0]
    b_total = biases[0].reshape(1, -1)
    for w, b in zip(weights[1:], biases[1:]):
        w_total = w_total @ w
        b_total = b_total @ w + b.reshape(1, -1)
    return jnp.asarray(w_total, jnp.float32), jnp.asarray(b_total, jnp.float32)


def _choose_tile(batch, tile_b):
    """Pick a batch tile: multiple of 8, <= tile_b, and (when possible)
    yielding >= 2 grid steps so v7x's two TensorCores both get work."""
    b8 = _round_up(max(batch, 8), 8)
    tb = min(tile_b, b8)
    tb = max(8, (tb // 8) * 8)              # enforce sublane multiple of 8
    if _cdiv(b8, tb) < 2 and b8 >= 16:       # single step but splittable
        tb = max(8, _round_up(_cdiv(b8, 2), 8))
    return tb


# --------------------------------------------------------------------------
# Forward: single pallas_call, no wrapper-side pads or slices.
# --------------------------------------------------------------------------
def fc_forward(x, w_total, b_total, *, tile_b=4096):
    """Apply the fused FC chain (+ final tanh).

    x:       (..., d_in)
    w_total: (d_in, d_out) fused weight (from fuse_fc_params)
    b_total: (1, d_out) fused bias
    """
    lead_shape = x.shape[:-1]
    d_in = x.shape[-1]
    d_out = w_total.shape[1]

    x2 = x.reshape(-1, d_in).astype(jnp.float32)
    B = x2.shape[0]

    tb = _choose_tile(B, tile_b)
    grid = (_cdiv(B, tb),)                  # ragged trailing block is masked

    out = pl.pallas_call(
        fc_fused_kernel,
        out_shape=jax.ShapeDtypeStruct((B, d_out), x.dtype),
        grid=grid,
        in_specs=[
            pl.BlockSpec((tb, d_in), lambda i: (i, 0)),     # x tile per step
            pl.BlockSpec((d_in, d_out), lambda i: (0, 0)),  # W_total, resident
            pl.BlockSpec((1, d_out), lambda i: (0, 0)),     # b_total, resident
        ],
        out_specs=pl.BlockSpec((tb, d_out), lambda i: (i, 0)),
        compiler_params=pltpu.CompilerParams(
            dimension_semantics=("parallel",),   # shard batch tiles across TCs
            vmem_limit_bytes=32 << 20,           # safe on v5e/v6e/v7x
        ),
    )(x2, w_total, b_total)

    return out.reshape(*lead_shape, d_out)


# --------------------------------------------------------------------------
# Init mimicking nn.Linear's default uniform(-1/sqrt(fan_in), 1/sqrt(fan_in)).
# --------------------------------------------------------------------------
def init_fc_params(layer_dims, key):
    dims = list(layer_dims) + [2]            # FC.__init__ appends 2
    weights, biases = [], []
    for i in range(len(dims) - 1):
        d_in, d_out = dims[i], dims[i + 1]
        key, kw, kb = jax.random.split(key, 3)
        bound = 1.0 / math.sqrt(d_in)
        # stored as (d_in, d_out) == PyTorch weight.T
        w = jax.random.uniform(kw, (d_in, d_out), jnp.float32, -bound, bound)
        b = jax.random.uniform(kb, (d_out,), jnp.float32, -bound, bound)
        weights.append(w)
        biases.append(b)
    return weights, biases


if __name__ == "__main__":
    key = jax.random.PRNGKey(0)
    key, kx = jax.random.split(key)

    # FC(layer_dims=[32, 16]) -> layers: 32->16, 16->2, then tanh
    layer_dims = [32, 16]
    weights, biases = init_fc_params(layer_dims, key)

    # One-time fusion (hoisted out of the per-call path).
    w_total, b_total = fuse_fc_params(weights, biases)

    batch = 8
    x = jax.random.normal(kx, (batch, layer_dims[0]), jnp.float32)

    out = fc_forward(x, w_total, b_total)
    out = jax.block_until_ready(out)

    # Pure-JAX reference: sequential linears (matching the PyTorch forward) + tanh.
    ref = x
    for w, b in zip(weights, biases):
        ref = ref @ w + b
    ref = jnp.tanh(ref)

    assert out.shape == (batch, 2), f"bad shape {out.shape}"
    assert jnp.allclose(out, ref, atol=1e-4, rtol=1e-4), (
        f"max abs err {jnp.max(jnp.abs(out - ref))}")

    print("KERNEL_OK")
</pallas_src>

<mosaic_0001>
module attributes {stable_mosaic.version = 11 : i64} {
  func.func @fc_fused_kernel(%arg0: i32, %arg1: memref<8x32xf32, #tpu.memory_space<vmem>>, %arg2: memref<32x2xf32, #tpu.memory_space<vmem>>, %arg3: memref<1x2xf32, #tpu.memory_space<vmem>>, %arg4: memref<8x2xf32, #tpu.memory_space<vmem>>) attributes {dimension_semantics = [#tpu.dimension_semantics<parallel>], iteration_bounds = array<i64: 1>, scalar_prefetch = 0 : i64, scratch_operands = 0 : i64, tpu.core_type = #tpu.core_type<tc>, window_params = [{transform_indices = @transform_0, window_bounds = array<i64: 8, 32>}, {pipeline_mode = #tpu.pipeline_mode<synchronous>, transform_indices = @transform_1, window_bounds = array<i64: 32, 2>}, {pipeline_mode = #tpu.pipeline_mode<synchronous>, transform_indices = @transform_2, window_bounds = array<i64: 1, 2>}, {transform_indices = @transform_3, window_bounds = array<i64: 8, 2>}]} {
    %c0 = arith.constant 0 : index
    %c0_0 = arith.constant 0 : index
    %0 = vector.load %arg1[%c0, %c0_0] : memref<8x32xf32, #tpu.memory_space<vmem>>, vector<8x32xf32>
    %c0_1 = arith.constant 0 : index
    %c0_2 = arith.constant 0 : index
    %1 = vector.load %arg2[%c0_1, %c0_2] : memref<32x2xf32, #tpu.memory_space<vmem>>, vector<32x2xf32>
    %cst = arith.constant dense<0.000000e+00> : vector<8x2xf32>
    %2 = tpu.matmul %0, %1, %cst {dimension_numbers = #tpu.dot_dimension_numbers<[1], [0], [0], [1], [0, 0, 1, 1], [], []>} : vector<8x32xf32>, vector<32x2xf32>, vector<8x2xf32> -> vector<8x2xf32>
    %c0_3 = arith.constant 0 : index
    %c0_4 = arith.constant 0 : index
    %3 = vector.load %arg3[%c0_3, %c0_4] : memref<1x2xf32, #tpu.memory_space<vmem>>, vector<1x2xf32>
    %4 = vector.broadcast %3 : vector<1x2xf32> to vector<8x2xf32>
    %5 = arith.addf %2, %4 : vector<8x2xf32>
    %6 = math.tanh %5 : vector<8x2xf32>
    %c0_5 = arith.constant 0 : index
    %c0_6 = arith.constant 0 : index
    %7 = vector.load %arg4[%c0_5, %c0_6] : memref<8x2xf32, #tpu.memory_space<vmem>>, vector<8x2xf32>
    tpu.vector_store %arg4[%c0_5, %c0_6], %6 {strides = array<i32>} : memref<8x2xf32, #tpu.memory_space<vmem>>, vector<8x2xf32>,
    return
  }
  func.func @transform_0(%arg0: i32) -> (i32, i32) {
    %c0_i32 = arith.constant 0 : i32
    %c0_i32_0 = arith.constant 0 : i32
    return %arg0, %c0_i32 : i32, i32
  }
  func.func @transform_1(%arg0: i32) -> (i32, i32) {
    %c0_i32 = arith.constant 0 : i32
    %c0_i32_0 = arith.constant 0 : i32
    %c0_i32_1 = arith.constant 0 : i32
    return %c0_i32, %c0_i32_0 : i32, i32
  }
  func.func @transform_2(%arg0: i32) -> (i32, i32) {
    %c0_i32 = arith.constant 0 : i32
    %c0_i32_0 = arith.constant 0 : i32
    %c0_i32_1 = arith.constant 0 : i32
    return %c0_i32, %c0_i32_0 : i32, i32
  }
  func.func @transform_3(%arg0: i32) -> (i32, i32) {
    %c0_i32 = arith.constant 0 : i32
    %c0_i32_0 = arith.constant 0 : i32
    return %arg0, %c0_i32 : i32, i32
  }
}

</mosaic_0001>

<bundles_post_ra>
// kernel: tpu_custom_call.1
= control target key start
LH: loop header
LB: loop body
LE: loop exit
PB: predicated region body
PF: predicated region fallthrough
CT: control target
= control target key end

     0   :  { %v136_v0 = vmov 0.0|0.0   ;;  %vm137_vm0 = vmmov 0   ;;  %v138_v4 = vmov 0.0   ;;  %vm26_vm1 = vcmask 261120   ;;  %s180_s1 = inlined_call_operand.vmem [shape: f32[32,2], index: 1, kind: input, shape index: {}]   ;;  %s181_s0 = inlined_call_operand.vmem [shape: f32[8,32], index: 0, kind: input, shape index: {}]   ;;  %s182_s2 = inlined_call_operand.vmem [shape: f32[1,2], index: 2, kind: input, shape index: {}]   ;;  %s183_s3 = inlined_call_operand.vmem [shape: f32[8,2], index: 3, kind: output, shape index: {}]  }
   0x1   :  { %125 = vmatprep.subr.bf16.mxu0 %v136_v0  ;;  %v15_v1 = vld [vmem:[%s180_s1] sm:$0xff]  ;;  %v16_v2 = vld [vmem:[%s180_s1 + $0x8] sm:$0xff]  ;;  %v17_v3 = vld [vmem:[%s180_s1 + $0x10] sm:$0xff]  ;;  %122 = vmatprep.mubr.msk.f32.mxu0 %vm137_vm0, %v138_v4  ;;  %vm101_vm2 = vcmask 15360  }
   0x2   :  { %v126_v5 = vpack.c.bf16 %v16_v2, %v15_v1  ;;  %v18_v6 = vld [vmem:[%s180_s1 + $0x18] sm:$0xff]  ;;  %v14_v8 = vld [vmem:[%s181_s0] sm:$0xff] }
   0x3   :  { %v129_v7 = vpack.c.bf16 %v18_v6, %v17_v3  ;;  %v107_v9 = vld [vmem:[%s182_s2] ss:$0 sm:$0xff] }
   0x4   :  { %127 = vmatpush3.bf16.msra.mxu0 %v126_v5 }
   0x5   :  { %128 = vmatprep.subr.bf16.mxu0 %v136_v0 }
   0x8   :  { %130 = vmatpush3.bf16.msra.mxu0 %v129_v7 }
   0xb   :  { %123 = vmatmul.mubr.msk.f32.vlgmr.msra.gmra.mrb[0].mxu0 %vm26_vm1, %v14_v8 }
  0xde   :  { %v96_v10 = vpop.f32.mrb[0].mxu0 }
  0xdf   :  { %v97_v11 = vadd.f32 %v107_v9, %v96_v10  ;;  %v124_v12 = vpop.f32.mrb[1].mxu0 }
  0xe1   :  { %134 = vtanh.f32 %v97_v11 }
  0xeb   :  { %v135_v13 = vpop.eup %134 }
  0xec   :  { %102 = vst.msk [vmem:[%s183_s3] sm:$0xff] %vm101_vm2, %v135_v13 }

</bundles_post_ra>
